<compile_context>
chip_gen: v5e
topology: v5e:2x2
jax: 0.10.0
libtpu: 0.0.40
codegen_flags: <defaults>
</compile_context>

<pallas_src>
import functools
import math

import jax
import jax.numpy as jnp
from jax.experimental import pallas as pl
from jax.experimental.pallas import tpu as pltpu


def grud_kernel(xm_ref, p_ref, out_ref, *, seq_len, out_dim, batch):
    B = batch
    F = p_ref.shape[-1]

    # ---- single packed param slab, loaded once; all row slices / broadcasts
    #      hoisted out of the recurrence.
    p = p_ref[...]                                   # (13 + out_dim + 1, F)
    w_xz = jnp.broadcast_to(p[0:1], (B, F))
    w_hz = jnp.broadcast_to(p[1:2], (B, F))
    w_mz = jnp.broadcast_to(p[2:3], (B, F))
    w_xr = jnp.broadcast_to(p[3:4], (B, F))
    w_hr = jnp.broadcast_to(p[4:5], (B, F))
    w_mr = jnp.broadcast_to(p[5:6], (B, F))
    w_xh = jnp.broadcast_to(p[6:7], (B, F))
    w_hh = jnp.broadcast_to(p[7:8], (B, F))
    w_mh = jnp.broadcast_to(p[8:9], (B, F))
    b_z = jnp.broadcast_to(p[9:10], (B, F))
    b_r = jnp.broadcast_to(p[10:11], (B, F))
    b_h = jnp.broadcast_to(p[11:12], (B, F))
    x_mean = jnp.broadcast_to(p[12:13], (B, F))
    wclsT = p[13:13 + out_dim, :]                    # (out_dim, F)
    b_cls = p[13 + out_dim:14 + out_dim, 0:out_dim]  # (1, out_dim)

    def step(t, h):
        xm_t = xm_ref[t]                 # (2B, F): one load per step
        x_t = xm_t[0:B, :]               # sublane slice
        m_t = xm_t[B:2 * B, :]           # sublane slice
        # imputation: m*x + (1-m)*x_mean == x_mean + m*(x - x_mean)
        x = x_mean + m_t * (x_t - x_mean)
        # off-critical-path pre-activations (independent of r)
        hh_h = w_hh * h
        pre_z = w_xz * x + w_hz * h + w_mz * m_t + b_z
        pre_r = w_xr * x + w_hr * h + w_mr * m_t + b_r
        pre_h = w_xh * x + w_mh * m_t + b_h
        z = jax.nn.sigmoid(pre_z)
        r = jax.nn.sigmoid(pre_r)
        # w_hh*(r*h) == (w_hh*h)*r  -> one fewer op after sigmoid(r)
        h_tilde = jnp.tanh(pre_h + hh_h * r)
        # (1-z)*h + z*h_tilde == h + z*(h_tilde - h)
        return h + z * (h_tilde - h)

    h = jnp.zeros((B, F), jnp.float32)
    if seq_len <= 64:
        # fully unrolled, static time indices (one padded tile per step)
        for t in range(seq_len):
            h = step(t, h)
    else:
        # bounded unroll keeps instruction count / vreg live ranges sane
        h = jax.lax.fori_loop(0, seq_len, step, h, unroll=8)

    # ---- fused classifier: sigmoid(h @ W_cls + b_cls) on VPU/XLU
    cols = [jnp.sum(h * wclsT[j:j + 1, :], axis=-1, keepdims=True)
            for j in range(out_dim)]
    logits = jnp.concatenate(cols, axis=-1) + b_cls   # (B, out_dim)
    out_ref[...] = jax.nn.sigmoid(logits)


def grud_forward(inp, params):
    """inp: (B, 3, F, T) float32, matching the PyTorch layout."""
    B, _, F, T = inp.shape
    out_dim = params["b_cls"].shape[-1]

    # Time-major X/Mask slab with channel and batch merged: (T, 2*B, F).
    # Rows 0:B of each step are X, rows B:2B are Mask.  Delta is unused.
    xm = (jnp.transpose(inp[:, :2], (3, 1, 0, 2))
          .reshape(T, 2 * B, F).astype(jnp.float32))

    # One packed parameter slab -> one DMA.
    w = params["w"].astype(jnp.float32)                    # (9, F)
    b = params["b"].astype(jnp.float32)                    # (3, F)
    x_mean = params["x_mean"].reshape(1, F).astype(jnp.float32)
    w_cls_t = params["w_cls"].T.astype(jnp.float32)        # (out_dim, F)
    b_cls_row = jnp.zeros((1, F), jnp.float32).at[0, :out_dim].set(
        params["b_cls"].astype(jnp.float32))
    slab = jnp.concatenate([w, b, x_mean, w_cls_t, b_cls_row], axis=0)

    kernel = functools.partial(grud_kernel, seq_len=T, out_dim=out_dim,
                               batch=B)

    vmem = pltpu.MemorySpace.VMEM
    out = pl.pallas_call(
        kernel,
        out_shape=jax.ShapeDtypeStruct((B, out_dim), jnp.float32),
        # single invocation (no grid): both operands fully resident in VMEM
        in_specs=[pl.BlockSpec(memory_space=vmem),
                  pl.BlockSpec(memory_space=vmem)],
        out_specs=pl.BlockSpec(memory_space=vmem),
    )(xm, slab)
    return out


def grud_reference(inp, params):
    """Pure-JAX reference mirroring the PyTorch forward (dropout=0 branch)."""
    B, _, F, T = inp.shape
    X, M = inp[:, 0], inp[:, 1]
    w, b = params["w"], params["b"]
    x_mean = params["x_mean"]
    h = jnp.zeros((B, F), jnp.float32)
    for t in range(T):
        x_t, m_t = X[:, :, t], M[:, :, t]
        x = m_t * x_t + (1.0 - m_t) * x_mean
        z = jax.nn.sigmoid(w[0] * x + w[1] * h + w[2] * m_t + b[0])
        r = jax.nn.sigmoid(w[3] * x + w[4] * h + w[5] * m_t + b[1])
        h_tilde = jnp.tanh(w[6] * x + w[7] * (r * h) + w[8] * m_t + b[2])
        h = (1.0 - z) * h + z * h_tilde
    return jax.nn.sigmoid(h @ params["w_cls"] + params["b_cls"])


if __name__ == "__main__":
    # Shapes implied by the module: input_size = hidden_size = 23,
    # default-task classifier is Linear(23, 2).
    B, F, T = 2, 23, 8
    OUT = 2

    key = jax.random.PRNGKey(0)
    k = jax.random.split(key, 8)

    stdv = 1.0 / math.sqrt(F)  # reset_parameters(): uniform(-stdv, stdv)
    params = {
        # rows: xz, hz, mz, xr, hr, mr, xh, hh, mh
        "w": jax.random.uniform(k[0], (9, F), jnp.float32, -stdv, stdv),
        # rows: b_z, b_r, b_h
        "b": jax.random.uniform(k[1], (3, F), jnp.float32, -stdv, stdv),
        "w_cls": jax.random.uniform(k[2], (F, OUT), jnp.float32, -stdv, stdv),
        "b_cls": jax.random.uniform(k[3], (OUT,), jnp.float32, -stdv, stdv),
        "x_mean": jax.random.normal(k[4], (F,), jnp.float32) * 0.5,
    }

    X_data = jax.random.normal(k[5], (B, F, T), jnp.float32)
    Mask = jax.random.bernoulli(k[6], 0.7, (B, F, T)).astype(jnp.float32)
    Delta = jax.random.uniform(k[7], (B, F, T), jnp.float32)  # unused
    inp = jnp.stack([X_data, Mask, Delta], axis=1)            # (B, 3, F, T)

    out = jax.block_until_ready(grud_forward(inp, params))
    ref = jax.block_until_ready(grud_reference(inp, params))

    assert out.shape == (B, OUT), out.shape
    assert jnp.allclose(out, ref, atol=1e-5, rtol=1e-5), (out, ref)
    print("KERNEL_OK")
</pallas_src>

<mosaic_0001>
module attributes {stable_mosaic.version = 11 : i64} {
  func.func @grud_kernel(%arg0: memref<8x4x23xf32, #tpu.memory_space<vmem>>, %arg1: memref<16x23xf32, #tpu.memory_space<vmem>>, %arg2: memref<2x2xf32, #tpu.memory_space<vmem>>) attributes {dimension_semantics = [], scalar_prefetch = 0 : i64, scratch_operands = 0 : i64, tpu.core_type = #tpu.core_type<tc>} {
    %c0 = arith.constant 0 : index
    %c0_0 = arith.constant 0 : index
    %0 = vector.load %arg1[%c0, %c0_0] : memref<16x23xf32, #tpu.memory_space<vmem>>, vector<16x23xf32>
    %1 = vector.extract_strided_slice %0 {offsets = [0, 0], sizes = [1, 23], strides = [1, 1]} : vector<16x23xf32> to vector<1x23xf32>
    %2 = vector.shape_cast %1 : vector<1x23xf32> to vector<1x23xf32>
    %3 = vector.broadcast %2 : vector<1x23xf32> to vector<2x23xf32>
    %4 = vector.extract_strided_slice %0 {offsets = [1, 0], sizes = [1, 23], strides = [1, 1]} : vector<16x23xf32> to vector<1x23xf32>
    %5 = vector.shape_cast %4 : vector<1x23xf32> to vector<1x23xf32>
    %6 = vector.broadcast %5 : vector<1x23xf32> to vector<2x23xf32>
    %7 = vector.extract_strided_slice %0 {offsets = [2, 0], sizes = [1, 23], strides = [1, 1]} : vector<16x23xf32> to vector<1x23xf32>
    %8 = vector.shape_cast %7 : vector<1x23xf32> to vector<1x23xf32>
    %9 = vector.broadcast %8 : vector<1x23xf32> to vector<2x23xf32>
    %10 = vector.extract_strided_slice %0 {offsets = [3, 0], sizes = [1, 23], strides = [1, 1]} : vector<16x23xf32> to vector<1x23xf32>
    %11 = vector.shape_cast %10 : vector<1x23xf32> to vector<1x23xf32>
    %12 = vector.broadcast %11 : vector<1x23xf32> to vector<2x23xf32>
    %13 = vector.extract_strided_slice %0 {offsets = [4, 0], sizes = [1, 23], strides = [1, 1]} : vector<16x23xf32> to vector<1x23xf32>
    %14 = vector.shape_cast %13 : vector<1x23xf32> to vector<1x23xf32>
    %15 = vector.broadcast %14 : vector<1x23xf32> to vector<2x23xf32>
    %16 = vector.extract_strided_slice %0 {offsets = [5, 0], sizes = [1, 23], strides = [1, 1]} : vector<16x23xf32> to vector<1x23xf32>
    %17 = vector.shape_cast %16 : vector<1x23xf32> to vector<1x23xf32>
    %18 = vector.broadcast %17 : vector<1x23xf32> to vector<2x23xf32>
    %19 = vector.extract_strided_slice %0 {offsets = [6, 0], sizes = [1, 23], strides = [1, 1]} : vector<16x23xf32> to vector<1x23xf32>
    %20 = vector.shape_cast %19 : vector<1x23xf32> to vector<1x23xf32>
    %21 = vector.broadcast %20 : vector<1x23xf32> to vector<2x23xf32>
    %22 = vector.extract_strided_slice %0 {offsets = [7, 0], sizes = [1, 23], strides = [1, 1]} : vector<16x23xf32> to vector<1x23xf32>
    %23 = vector.shape_cast %22 : vector<1x23xf32> to vector<1x23xf32>
    %24 = vector.broadcast %23 : vector<1x23xf32> to vector<2x23xf32>
    %25 = vector.extract_strided_slice %0 {offsets = [8, 0], sizes = [1, 23], strides = [1, 1]} : vector<16x23xf32> to vector<1x23xf32>
    %26 = vector.shape_cast %25 : vector<1x23xf32> to vector<1x23xf32>
    %27 = vector.broadcast %26 : vector<1x23xf32> to vector<2x23xf32>
    %28 = vector.extract_strided_slice %0 {offsets = [9, 0], sizes = [1, 23], strides = [1, 1]} : vector<16x23xf32> to vector<1x23xf32>
    %29 = vector.shape_cast %28 : vector<1x23xf32> to vector<1x23xf32>
    %30 = vector.broadcast %29 : vector<1x23xf32> to vector<2x23xf32>
    %31 = vector.extract_strided_slice %0 {offsets = [10, 0], sizes = [1, 23], strides = [1, 1]} : vector<16x23xf32> to vector<1x23xf32>
    %32 = vector.shape_cast %31 : vector<1x23xf32> to vector<1x23xf32>
    %33 = vector.broadcast %32 : vector<1x23xf32> to vector<2x23xf32>
    %34 = vector.extract_strided_slice %0 {offsets = [11, 0], sizes = [1, 23], strides = [1, 1]} : vector<16x23xf32> to vector<1x23xf32>
    %35 = vector.shape_cast %34 : vector<1x23xf32> to vector<1x23xf32>
    %36 = vector.broadcast %35 : vector<1x23xf32> to vector<2x23xf32>
    %37 = vector.extract_strided_slice %0 {offsets = [12, 0], sizes = [1, 23], strides = [1, 1]} : vector<16x23xf32> to vector<1x23xf32>
    %38 = vector.shape_cast %37 : vector<1x23xf32> to vector<1x23xf32>
    %39 = vector.broadcast %38 : vector<1x23xf32> to vector<2x23xf32>
    %40 = vector.extract_strided_slice %0 {offsets = [13, 0], sizes = [2, 23], strides = [1, 1]} : vector<16x23xf32> to vector<2x23xf32>
    %41 = vector.extract_strided_slice %0 {offsets = [15, 0], sizes = [1, 2], strides = [1, 1]} : vector<16x23xf32> to vector<1x2xf32>
    %cst = arith.constant 0.000000e+00 : f32
    %42 = vector.broadcast %cst : f32 to vector<2x23xf32>
    %c0_1 = arith.constant 0 : index
    %c0_2 = arith.constant 0 : index
    %c0_3 = arith.constant 0 : index
    %43 = vector.load %arg0[%c0_1, %c0_2, %c0_3] : memref<8x4x23xf32, #tpu.memory_space<vmem>>, vector<1x4x23xf32>
    %44 = vector.shape_cast %43 : vector<1x4x23xf32> to vector<4x23xf32>
    %45 = vector.extract_strided_slice %44 {offsets = [0, 0], sizes = [2, 23], strides = [1, 1]} : vector<4x23xf32> to vector<2x23xf32>
    %46 = vector.extract_strided_slice %44 {offsets = [2, 0], sizes = [2, 23], strides = [1, 1]} : vector<4x23xf32> to vector<2x23xf32>
    %47 = arith.subf %45, %39 : vector<2x23xf32>
    %48 = arith.mulf %46, %47 : vector<2x23xf32>
    %49 = arith.addf %39, %48 : vector<2x23xf32>
    %50 = arith.mulf %24, %42 : vector<2x23xf32>
    %51 = arith.mulf %3, %49 : vector<2x23xf32>
    %52 = arith.mulf %6, %42 : vector<2x23xf32>
    %53 = arith.addf %51, %52 : vector<2x23xf32>
    %54 = arith.mulf %9, %46 : vector<2x23xf32>
    %55 = arith.addf %53, %54 : vector<2x23xf32>
    %56 = arith.addf %55, %30 : vector<2x23xf32>
    %57 = arith.mulf %12, %49 : vector<2x23xf32>
    %58 = arith.mulf %15, %42 : vector<2x23xf32>
    %59 = arith.addf %57, %58 : vector<2x23xf32>
    %60 = arith.mulf %18, %46 : vector<2x23xf32>
    %61 = arith.addf %59, %60 : vector<2x23xf32>
    %62 = arith.addf %61, %33 : vector<2x23xf32>
    %63 = arith.mulf %21, %49 : vector<2x23xf32>
    %64 = arith.mulf %27, %46 : vector<2x23xf32>
    %65 = arith.addf %63, %64 : vector<2x23xf32>
    %66 = arith.addf %65, %36 : vector<2x23xf32>
    %67 = arith.negf %56 : vector<2x23xf32>
    %68 = math.exp %67 : vector<2x23xf32>
    %cst_4 = arith.constant 1.000000e+00 : f32
    %69 = vector.broadcast %cst_4 : f32 to vector<2x23xf32>
    %70 = arith.addf %69, %68 : vector<2x23xf32>
    %71 = arith.divf %69, %70 : vector<2x23xf32>
    %72 = arith.negf %62 : vector<2x23xf32>
    %73 = math.exp %72 : vector<2x23xf32>
    %cst_5 = arith.constant 1.000000e+00 : f32
    %74 = vector.broadcast %cst_5 : f32 to vector<2x23xf32>
    %75 = arith.addf %74, %73 : vector<2x23xf32>
    %76 = arith.divf %74, %75 : vector<2x23xf32>
    %77 = arith.mulf %50, %76 : vector<2x23xf32>
    %78 = arith.addf %66, %77 : vector<2x23xf32>
    %79 = math.tanh %78 : vector<2x23xf32>
    %80 = arith.subf %79, %42 : vector<2x23xf32>
    %81 = arith.mulf %71, %80 : vector<2x23xf32>
    %82 = arith.addf %42, %81 : vector<2x23xf32>
    %c1 = arith.constant 1 : index
    %c0_6 = arith.constant 0 : index
    %c0_7 = arith.constant 0 : index
    %83 = vector.load %arg0[%c1, %c0_6, %c0_7] : memref<8x4x23xf32, #tpu.memory_space<vmem>>, vector<1x4x23xf32>
    %84 = vector.shape_cast %83 : vector<1x4x23xf32> to vector<4x23xf32>
    %85 = vector.extract_strided_slice %84 {offsets = [0, 0], sizes = [2, 23], strides = [1, 1]} : vector<4x23xf32> to vector<2x23xf32>
    %86 = vector.extract_strided_slice %84 {offsets = [2, 0], sizes = [2, 23], strides = [1, 1]} : vector<4x23xf32> to vector<2x23xf32>
    %87 = arith.subf %85, %39 : vector<2x23xf32>
    %88 = arith.mulf %86, %87 : vector<2x23xf32>
    %89 = arith.addf %39, %88 : vector<2x23xf32>
    %90 = arith.mulf %24, %82 : vector<2x23xf32>
    %91 = arith.mulf %3, %89 : vector<2x23xf32>
    %92 = arith.mulf %6, %82 : vector<2x23xf32>
    %93 = arith.addf %91, %92 : vector<2x23xf32>
    %94 = arith.mulf %9, %86 : vector<2x23xf32>
    %95 = arith.addf %93, %94 : vector<2x23xf32>
    %96 = arith.addf %95, %30 : vector<2x23xf32>
    %97 = arith.mulf %12, %89 : vector<2x23xf32>
    %98 = arith.mulf %15, %82 : vector<2x23xf32>
    %99 = arith.addf %97, %98 : vector<2x23xf32>
    %100 = arith.mulf %18, %86 : vector<2x23xf32>
    %101 = arith.addf %99, %100 : vector<2x23xf32>
    %102 = arith.addf %101, %33 : vector<2x23xf32>
    %103 = arith.mulf %21, %89 : vector<2x23xf32>
    %104 = arith.mulf %27, %86 : vector<2x23xf32>
    %105 = arith.addf %103, %104 : vector<2x23xf32>
    %106 = arith.addf %105, %36 : vector<2x23xf32>
    %107 = arith.negf %96 : vector<2x23xf32>
    %108 = math.exp %107 : vector<2x23xf32>
    %cst_8 = arith.constant 1.000000e+00 : f32
    %109 = vector.broadcast %cst_8 : f32 to vector<2x23xf32>
    %110 = arith.addf %109, %108 : vector<2x23xf32>
    %111 = arith.divf %109, %110 : vector<2x23xf32>
    %112 = arith.negf %102 : vector<2x23xf32>
    %113 = math.exp %112 : vector<2x23xf32>
    %cst_9 = arith.constant 1.000000e+00 : f32
    %114 = vector.broadcast %cst_9 : f32 to vector<2x23xf32>
    %115 = arith.addf %114, %113 : vector<2x23xf32>
    %116 = arith.divf %114, %115 : vector<2x23xf32>
    %117 = arith.mulf %90, %116 : vector<2x23xf32>
    %118 = arith.addf %106, %117 : vector<2x23xf32>
    %119 = math.tanh %118 : vector<2x23xf32>
    %120 = arith.subf %119, %82 : vector<2x23xf32>
    %121 = arith.mulf %111, %120 : vector<2x23xf32>
    %122 = arith.addf %82, %121 : vector<2x23xf32>
    %c2 = arith.constant 2 : index
    %c0_10 = arith.constant 0 : index
    %c0_11 = arith.constant 0 : index
    %123 = vector.load %arg0[%c2, %c0_10, %c0_11] : memref<8x4x23xf32, #tpu.memory_space<vmem>>, vector<1x4x23xf32>
    %124 = vector.shape_cast %123 : vector<1x4x23xf32> to vector<4x23xf32>
    %125 = vector.extract_strided_slice %124 {offsets = [0, 0], sizes = [2, 23], strides = [1, 1]} : vector<4x23xf32> to vector<2x23xf32>
    %126 = vector.extract_strided_slice %124 {offsets = [2, 0], sizes = [2, 23], strides = [1, 1]} : vector<4x23xf32> to vector<2x23xf32>
    %127 = arith.subf %125, %39 : vector<2x23xf32>
    %128 = arith.mulf %126, %127 : vector<2x23xf32>
    %129 = arith.addf %39, %128 : vector<2x23xf32>
    %130 = arith.mulf %24, %122 : vector<2x23xf32>
    %131 = arith.mulf %3, %129 : vector<2x23xf32>
    %132 = arith.mulf %6, %122 : vector<2x23xf32>
    %133 = arith.addf %131, %132 : vector<2x23xf32>
    %134 = arith.mulf %9, %126 : vector<2x23xf32>
    %135 = arith.addf %133, %134 : vector<2x23xf32>
    %136 = arith.addf %135, %30 : vector<2x23xf32>
    %137 = arith.mulf %12, %129 : vector<2x23xf32>
    %138 = arith.mulf %15, %122 : vector<2x23xf32>
    %139 = arith.addf %137, %138 : vector<2x23xf32>
    %140 = arith.mulf %18, %126 : vector<2x23xf32>
    %141 = arith.addf %139, %140 : vector<2x23xf32>
    %142 = arith.addf %141, %33 : vector<2x23xf32>
    %143 = arith.mulf %21, %129 : vector<2x23xf32>
    %144 = arith.mulf %27, %126 : vector<2x23xf32>
    %145 = arith.addf %143, %144 : vector<2x23xf32>
    %146 = arith.addf %145, %36 : vector<2x23xf32>
    %147 = arith.negf %136 : vector<2x23xf32>
    %148 = math.exp %147 : vector<2x23xf32>
    %cst_12 = arith.constant 1.000000e+00 : f32
    %149 = vector.broadcast %cst_12 : f32 to vector<2x23xf32>
    %150 = arith.addf %149, %148 : vector<2x23xf32>
    %151 = arith.divf %149, %150 : vector<2x23xf32>
    %152 = arith.negf %142 : vector<2x23xf32>
    %153 = math.exp %152 : vector<2x23xf32>
    %cst_13 = arith.constant 1.000000e+00 : f32
    %154 = vector.broadcast %cst_13 : f32 to vector<2x23xf32>
    %155 = arith.addf %154, %153 : vector<2x23xf32>
    %156 = arith.divf %154, %155 : vector<2x23xf32>
    %157 = arith.mulf %130, %156 : vector<2x23xf32>
    %158 = arith.addf %146, %157 : vector<2x23xf32>
    %159 = math.tanh %158 : vector<2x23xf32>
    %160 = arith.subf %159, %122 : vector<2x23xf32>
    %161 = arith.mulf %151, %160 : vector<2x23xf32>
    %162 = arith.addf %122, %161 : vector<2x23xf32>
    %c3 = arith.constant 3 : index
    %c0_14 = arith.constant 0 : index
    %c0_15 = arith.constant 0 : index
    %163 = vector.load %arg0[%c3, %c0_14, %c0_15] : memref<8x4x23xf32, #tpu.memory_space<vmem>>, vector<1x4x23xf32>
    %164 = vector.shape_cast %163 : vector<1x4x23xf32> to vector<4x23xf32>
    %165 = vector.extract_strided_slice %164 {offsets = [0, 0], sizes = [2, 23], strides = [1, 1]} : vector<4x23xf32> to vector<2x23xf32>
    %166 = vector.extract_strided_slice %164 {offsets = [2, 0], sizes = [2, 23], strides = [1, 1]} : vector<4x23xf32> to vector<2x23xf32>
    %167 = arith.subf %165, %39 : vector<2x23xf32>
    %168 = arith.mulf %166, %167 : vector<2x23xf32>
    %169 = arith.addf %39, %168 : vector<2x23xf32>
    %170 = arith.mulf %24, %162 : vector<2x23xf32>
    %171 = arith.mulf %3, %169 : vector<2x23xf32>
    %172 = arith.mulf %6, %162 : vector<2x23xf32>
    %173 = arith.addf %171, %172 : vector<2x23xf32>
    %174 = arith.mulf %9, %166 : vector<2x23xf32>
    %175 = arith.addf %173, %174 : vector<2x23xf32>
    %176 = arith.addf %175, %30 : vector<2x23xf32>
    %177 = arith.mulf %12, %169 : vector<2x23xf32>
    %178 = arith.mulf %15, %162 : vector<2x23xf32>
    %179 = arith.addf %177, %178 : vector<2x23xf32>
    %180 = arith.mulf %18, %166 : vector<2x23xf32>
    %181 = arith.addf %179, %180 : vector<2x23xf32>
    %182 = arith.addf %181, %33 : vector<2x23xf32>
    %183 = arith.mulf %21, %169 : vector<2x23xf32>
    %184 = arith.mulf %27, %166 : vector<2x23xf32>
    %185 = arith.addf %183, %184 : vector<2x23xf32>
    %186 = arith.addf %185, %36 : vector<2x23xf32>
    %187 = arith.negf %176 : vector<2x23xf32>
    %188 = math.exp %187 : vector<2x23xf32>
    %cst_16 = arith.constant 1.000000e+00 : f32
    %189 = vector.broadcast %cst_16 : f32 to vector<2x23xf32>
    %190 = arith.addf %189, %188 : vector<2x23xf32>
    %191 = arith.divf %189, %190 : vector<2x23xf32>
    %192 = arith.negf %182 : vector<2x23xf32>
    %193 = math.exp %192 : vector<2x23xf32>
    %cst_17 = arith.constant 1.000000e+00 : f32
    %194 = vector.broadcast %cst_17 : f32 to vector<2x23xf32>
    %195 = arith.addf %194, %193 : vector<2x23xf32>
    %196 = arith.divf %194, %195 : vector<2x23xf32>
    %197 = arith.mulf %170, %196 : vector<2x23xf32>
    %198 = arith.addf %186, %197 : vector<2x23xf32>
    %199 = math.tanh %198 : vector<2x23xf32>
    %200 = arith.subf %199, %162 : vector<2x23xf32>
    %201 = arith.mulf %191, %200 : vector<2x23xf32>
    %202 = arith.addf %162, %201 : vector<2x23xf32>
    %c4 = arith.constant 4 : index
    %c0_18 = arith.constant 0 : index
    %c0_19 = arith.constant 0 : index
    %203 = vector.load %arg0[%c4, %c0_18, %c0_19] : memref<8x4x23xf32, #tpu.memory_space<vmem>>, vector<1x4x23xf32>
    %204 = vector.shape_cast %203 : vector<1x4x23xf32> to vector<4x23xf32>
    %205 = vector.extract_strided_slice %204 {offsets = [0, 0], sizes = [2, 23], strides = [1, 1]} : vector<4x23xf32> to vector<2x23xf32>
    %206 = vector.extract_strided_slice %204 {offsets = [2, 0], sizes = [2, 23], strides = [1, 1]} : vector<4x23xf32> to vector<2x23xf32>
    %207 = arith.subf %205, %39 : vector<2x23xf32>
    %208 = arith.mulf %206, %207 : vector<2x23xf32>
    %209 = arith.addf %39, %208 : vector<2x23xf32>
    %210 = arith.mulf %24, %202 : vector<2x23xf32>
    %211 = arith.mulf %3, %209 : vector<2x23xf32>
    %212 = arith.mulf %6, %202 : vector<2x23xf32>
    %213 = arith.addf %211, %212 : vector<2x23xf32>
    %214 = arith.mulf %9, %206 : vector<2x23xf32>
    %215 = arith.addf %213, %214 : vector<2x23xf32>
    %216 = arith.addf %215, %30 : vector<2x23xf32>
    %217 = arith.mulf %12, %209 : vector<2x23xf32>
    %218 = arith.mulf %15, %202 : vector<2x23xf32>
    %219 = arith.addf %217, %218 : vector<2x23xf32>
    %220 = arith.mulf %18, %206 : vector<2x23xf32>
    %221 = arith.addf %219, %220 : vector<2x23xf32>
    %222 = arith.addf %221, %33 : vector<2x23xf32>
    %223 = arith.mulf %21, %209 : vector<2x23xf32>
    %224 = arith.mulf %27, %206 : vector<2x23xf32>
    %225 = arith.addf %223, %224 : vector<2x23xf32>
    %226 = arith.addf %225, %36 : vector<2x23xf32>
    %227 = arith.negf %216 : vector<2x23xf32>
    %228 = math.exp %227 : vector<2x23xf32>
    %cst_20 = arith.constant 1.000000e+00 : f32
    %229 = vector.broadcast %cst_20 : f32 to vector<2x23xf32>
    %230 = arith.addf %229, %228 : vector<2x23xf32>
    %231 = arith.divf %229, %230 : vector<2x23xf32>
    %232 = arith.negf %222 : vector<2x23xf32>
    %233 = math.exp %232 : vector<2x23xf32>
    %cst_21 = arith.constant 1.000000e+00 : f32
    %234 = vector.broadcast %cst_21 : f32 to vector<2x23xf32>
    %235 = arith.addf %234, %233 : vector<2x23xf32>
    %236 = arith.divf %234, %235 : vector<2x23xf32>
    %237 = arith.mulf %210, %236 : vector<2x23xf32>
    %238 = arith.addf %226, %237 : vector<2x23xf32>
    %239 = math.tanh %238 : vector<2x23xf32>
    %240 = arith.subf %239, %202 : vector<2x23xf32>
    %241 = arith.mulf %231, %240 : vector<2x23xf32>
    %242 = arith.addf %202, %241 : vector<2x23xf32>
    %c5 = arith.constant 5 : index
    %c0_22 = arith.constant 0 : index
    %c0_23 = arith.constant 0 : index
    %243 = vector.load %arg0[%c5, %c0_22, %c0_23] : memref<8x4x23xf32, #tpu.memory_space<vmem>>, vector<1x4x23xf32>
    %244 = vector.shape_cast %243 : vector<1x4x23xf32> to vector<4x23xf32>
    %245 = vector.extract_strided_slice %244 {offsets = [0, 0], sizes = [2, 23], strides = [1, 1]} : vector<4x23xf32> to vector<2x23xf32>
    %246 = vector.extract_strided_slice %244 {offsets = [2, 0], sizes = [2, 23], strides = [1, 1]} : vector<4x23xf32> to vector<2x23xf32>
    %247 = arith.subf %245, %39 : vector<2x23xf32>
    %248 = arith.mulf %246, %247 : vector<2x23xf32>
    %249 = arith.addf %39, %248 : vector<2x23xf32>
    %250 = arith.mulf %24, %242 : vector<2x23xf32>
    %251 = arith.mulf %3, %249 : vector<2x23xf32>
    %252 = arith.mulf %6, %242 : vector<2x23xf32>
    %253 = arith.addf %251, %252 : vector<2x23xf32>
    %254 = arith.mulf %9, %246 : vector<2x23xf32>
    %255 = arith.addf %253, %254 : vector<2x23xf32>
    %256 = arith.addf %255, %30 : vector<2x23xf32>
    %257 = arith.mulf %12, %249 : vector<2x23xf32>
    %258 = arith.mulf %15, %242 : vector<2x23xf32>
    %259 = arith.addf %257, %258 : vector<2x23xf32>
    %260 = arith.mulf %18, %246 : vector<2x23xf32>
    %261 = arith.addf %259, %260 : vector<2x23xf32>
    %262 = arith.addf %261, %33 : vector<2x23xf32>
    %263 = arith.mulf %21, %249 : vector<2x23xf32>
    %264 = arith.mulf %27, %246 : vector<2x23xf32>
    %265 = arith.addf %263, %264 : vector<2x23xf32>
    %266 = arith.addf %265, %36 : vector<2x23xf32>
    %267 = arith.negf %256 : vector<2x23xf32>
    %268 = math.exp %267 : vector<2x23xf32>
    %cst_24 = arith.constant 1.000000e+00 : f32
    %269 = vector.broadcast %cst_24 : f32 to vector<2x23xf32>
    %270 = arith.addf %269, %268 : vector<2x23xf32>
    %271 = arith.divf %269, %270 : vector<2x23xf32>
    %272 = arith.negf %262 : vector<2x23xf32>
    %273 = math.exp %272 : vector<2x23xf32>
    %cst_25 = arith.constant 1.000000e+00 : f32
    %274 = vector.broadcast %cst_25 : f32 to vector<2x23xf32>
    %275 = arith.addf %274, %273 : vector<2x23xf32>
    %276 = arith.divf %274, %275 : vector<2x23xf32>
    %277 = arith.mulf %250, %276 : vector<2x23xf32>
    %278 = arith.addf %266, %277 : vector<2x23xf32>
    %279 = math.tanh %278 : vector<2x23xf32>
    %280 = arith.subf %279, %242 : vector<2x23xf32>
    %281 = arith.mulf %271, %280 : vector<2x23xf32>
    %282 = arith.addf %242, %281 : vector<2x23xf32>
    %c6 = arith.constant 6 : index
    %c0_26 = arith.constant 0 : index
    %c0_27 = arith.constant 0 : index
    %283 = vector.load %arg0[%c6, %c0_26, %c0_27] : memref<8x4x23xf32, #tpu.memory_space<vmem>>, vector<1x4x23xf32>
    %284 = vector.shape_cast %283 : vector<1x4x23xf32> to vector<4x23xf32>
    %285 = vector.extract_strided_slice %284 {offsets = [0, 0], sizes = [2, 23], strides = [1, 1]} : vector<4x23xf32> to vector<2x23xf32>
    %286 = vector.extract_strided_slice %284 {offsets = [2, 0], sizes = [2, 23], strides = [1, 1]} : vector<4x23xf32> to vector<2x23xf32>
    %287 = arith.subf %285, %39 : vector<2x23xf32>
    %288 = arith.mulf %286, %287 : vector<2x23xf32>
    %289 = arith.addf %39, %288 : vector<2x23xf32>
    %290 = arith.mulf %24, %282 : vector<2x23xf32>
    %291 = arith.mulf %3, %289 : vector<2x23xf32>
    %292 = arith.mulf %6, %282 : vector<2x23xf32>
    %293 = arith.addf %291, %292 : vector<2x23xf32>
    %294 = arith.mulf %9, %286 : vector<2x23xf32>
    %295 = arith.addf %293, %294 : vector<2x23xf32>
    %296 = arith.addf %295, %30 : vector<2x23xf32>
    %297 = arith.mulf %12, %289 : vector<2x23xf32>
    %298 = arith.mulf %15, %282 : vector<2x23xf32>
    %299 = arith.addf %297, %298 : vector<2x23xf32>
    %300 = arith.mulf %18, %286 : vector<2x23xf32>
    %301 = arith.addf %299, %300 : vector<2x23xf32>
    %302 = arith.addf %301, %33 : vector<2x23xf32>
    %303 = arith.mulf %21, %289 : vector<2x23xf32>
    %304 = arith.mulf %27, %286 : vector<2x23xf32>
    %305 = arith.addf %303, %304 : vector<2x23xf32>
    %306 = arith.addf %305, %36 : vector<2x23xf32>
    %307 = arith.negf %296 : vector<2x23xf32>
    %308 = math.exp %307 : vector<2x23xf32>
    %cst_28 = arith.constant 1.000000e+00 : f32
    %309 = vector.broadcast %cst_28 : f32 to vector<2x23xf32>
    %310 = arith.addf %309, %308 : vector<2x23xf32>
    %311 = arith.divf %309, %310 : vector<2x23xf32>
    %312 = arith.negf %302 : vector<2x23xf32>
    %313 = math.exp %312 : vector<2x23xf32>
    %cst_29 = arith.constant 1.000000e+00 : f32
    %314 = vector.broadcast %cst_29 : f32 to vector<2x23xf32>
    %315 = arith.addf %314, %313 : vector<2x23xf32>
    %316 = arith.divf %314, %315 : vector<2x23xf32>
    %317 = arith.mulf %290, %316 : vector<2x23xf32>
    %318 = arith.addf %306, %317 : vector<2x23xf32>
    %319 = math.tanh %318 : vector<2x23xf32>
    %320 = arith.subf %319, %282 : vector<2x23xf32>
    %321 = arith.mulf %311, %320 : vector<2x23xf32>
    %322 = arith.addf %282, %321 : vector<2x23xf32>
    %c7 = arith.constant 7 : index
    %c0_30 = arith.constant 0 : index
    %c0_31 = arith.constant 0 : index
    %323 = vector.load %arg0[%c7, %c0_30, %c0_31] : memref<8x4x23xf32, #tpu.memory_space<vmem>>, vector<1x4x23xf32>
    %324 = vector.shape_cast %323 : vector<1x4x23xf32> to vector<4x23xf32>
    %325 = vector.extract_strided_slice %324 {offsets = [0, 0], sizes = [2, 23], strides = [1, 1]} : vector<4x23xf32> to vector<2x23xf32>
    %326 = vector.extract_strided_slice %324 {offsets = [2, 0], sizes = [2, 23], strides = [1, 1]} : vector<4x23xf32> to vector<2x23xf32>
    %327 = arith.subf %325, %39 : vector<2x23xf32>
    %328 = arith.mulf %326, %327 : vector<2x23xf32>
    %329 = arith.addf %39, %328 : vector<2x23xf32>
    %330 = arith.mulf %24, %322 : vector<2x23xf32>
    %331 = arith.mulf %3, %329 : vector<2x23xf32>
    %332 = arith.mulf %6, %322 : vector<2x23xf32>
    %333 = arith.addf %331, %332 : vector<2x23xf32>
    %334 = arith.mulf %9, %326 : vector<2x23xf32>
    %335 = arith.addf %333, %334 : vector<2x23xf32>
    %336 = arith.addf %335, %30 : vector<2x23xf32>
    %337 = arith.mulf %12, %329 : vector<2x23xf32>
    %338 = arith.mulf %15, %322 : vector<2x23xf32>
    %339 = arith.addf %337, %338 : vector<2x23xf32>
    %340 = arith.mulf %18, %326 : vector<2x23xf32>
    %341 = arith.addf %339, %340 : vector<2x23xf32>
    %342 = arith.addf %341, %33 : vector<2x23xf32>
    %343 = arith.mulf %21, %329 : vector<2x23xf32>
    %344 = arith.mulf %27, %326 : vector<2x23xf32>
    %345 = arith.addf %343, %344 : vector<2x23xf32>
    %346 = arith.addf %345, %36 : vector<2x23xf32>
    %347 = arith.negf %336 : vector<2x23xf32>
    %348 = math.exp %347 : vector<2x23xf32>
    %cst_32 = arith.constant 1.000000e+00 : f32
    %349 = vector.broadcast %cst_32 : f32 to vector<2x23xf32>
    %350 = arith.addf %349, %348 : vector<2x23xf32>
    %351 = arith.divf %349, %350 : vector<2x23xf32>
    %352 = arith.negf %342 : vector<2x23xf32>
    %353 = math.exp %352 : vector<2x23xf32>
    %cst_33 = arith.constant 1.000000e+00 : f32
    %354 = vector.broadcast %cst_33 : f32 to vector<2x23xf32>
    %355 = arith.addf %354, %353 : vector<2x23xf32>
    %356 = arith.divf %354, %355 : vector<2x23xf32>
    %357 = arith.mulf %330, %356 : vector<2x23xf32>
    %358 = arith.addf %346, %357 : vector<2x23xf32>
    %359 = math.tanh %358 : vector<2x23xf32>
    %360 = arith.subf %359, %322 : vector<2x23xf32>
    %361 = arith.mulf %351, %360 : vector<2x23xf32>
    %362 = arith.addf %322, %361 : vector<2x23xf32>
    %363 = vector.extract_strided_slice %40 {offsets = [0, 0], sizes = [1, 23], strides = [1, 1]} : vector<2x23xf32> to vector<1x23xf32>
    %364 = vector.broadcast %363 : vector<1x23xf32> to vector<2x23xf32>
    %365 = arith.mulf %362, %364 : vector<2x23xf32>
    %cst_34 = arith.constant dense<0.000000e+00> : vector<2xf32>
    %366 = vector.multi_reduction <add>, %365, %cst_34 [1] : vector<2x23xf32> to vector<2xf32>
    %367 = vector.shape_cast %366 : vector<2xf32> to vector<2x1xf32>
    %368 = vector.extract_strided_slice %40 {offsets = [1, 0], sizes = [1, 23], strides = [1, 1]} : vector<2x23xf32> to vector<1x23xf32>
    %369 = vector.broadcast %368 : vector<1x23xf32> to vector<2x23xf32>
    %370 = arith.mulf %362, %369 : vector<2x23xf32>
    %cst_35 = arith.constant dense<0.000000e+00> : vector<2xf32>
    %371 = vector.multi_reduction <add>, %370, %cst_35 [1] : vector<2x23xf32> to vector<2xf32>
    %372 = vector.shape_cast %371 : vector<2xf32> to vector<2x1xf32>
    %373 = tpu.concatenate %367, %372 in 1 : vector<2x1xf32>, vector<2x1xf32> -> vector<2x2xf32>
    %374 = vector.broadcast %41 : vector<1x2xf32> to vector<2x2xf32>
    %375 = arith.addf %373, %374 : vector<2x2xf32>
    %376 = arith.negf %375 : vector<2x2xf32>
    %377 = math.exp %376 : vector<2x2xf32>
    %cst_36 = arith.constant 1.000000e+00 : f32
    %378 = vector.broadcast %cst_36 : f32 to vector<2x2xf32>
    %379 = arith.addf %378, %377 : vector<2x2xf32>
    %380 = arith.divf %378, %379 : vector<2x2xf32>
    %c0_37 = arith.constant 0 : index
    %c0_38 = arith.constant 0 : index
    %381 = vector.load %arg2[%c0_37, %c0_38] : memref<2x2xf32, #tpu.memory_space<vmem>>, vector<2x2xf32>
    tpu.vector_store %arg2[%c0_37, %c0_38], %380 {strides = array<i32>} : memref<2x2xf32, #tpu.memory_space<vmem>>, vector<2x2xf32>,
    return
  }
}

</mosaic_0001>

<bundles_post_ra>
// kernel: tpu_custom_call.1
= control target key start
LH: loop header
LB: loop body
LE: loop exit
PB: predicated region body
PF: predicated region fallthrough
CT: control target
= control target key end

     0   :  { %7 = vsyncpa [#allocation3], 0  ;;  %s1068_s0 = inlined_call_operand.hbm [shape: f32[8,4,23], index: 0, kind: input, shape index: {}]   ;;  %s1069_s1 = inlined_call_operand.hbm [shape: f32[16,23], index: 1, kind: input, shape index: {}]   ;;  %s1070_s2 = inlined_call_operand.hbm [shape: f32[2,2], index: 2, kind: output, shape index: {}]  }
   0x1   :  { %8 = vsyncpa [#allocation6], 0 }
   0x2   :  { %9 = vsyncpa [#allocation4], 0  ;;  %s14_s11 = sshll.u32 %s1068_s0, 4  ;;  %s850_s12 = smov [#allocation2]   ;;  %s15_s11 = int_to_ptr.hbm [resolvable:$true] %s14_s11 }
   0x3   :  { %s16_s13 = sshll.u32 %s850_s12, 4  ;;  %s27_s16 = sshll.u32 %s1069_s1, 4  ;;  %s17_s13 = int_to_ptr.vmem [resolvable:$true] %s16_s13  ;;  %s28_s16 = int_to_ptr.hbm [resolvable:$true] %s27_s16 }
   0x4   :  { %s851_s17 = smov 64   ;;  %s852_s18 = smov 4  }
   0x5   :  { %22 = dma.hbm_to_vmem [thread:$0]  %s15_s11, 512, %s17_s13, [#allocation3], %s851_s17, %s851_s17, %s852_s18  }
   0x6   :  { %s853_s19 = smov [#allocation5]   ;;  %s854_s21 = smov 128  }
   0x7   :  { %s29_s20 = sshll.u32 %s853_s19, 4  ;;  %s855_s22 = smov 8   ;;  %s30_s20 = int_to_ptr.vmem [resolvable:$true] %s29_s20 }
   0x8   :  { %35 = dma.hbm_to_vmem [thread:$0]  %s28_s16, 256, %s30_s20, [#allocation6], %s854_s21, %s854_s21, %s855_s22  }
   0x9   :  { %844 = dma.done.wait [#allocation3], 512  }
   0xa   :  { %845 = vsyncadd [#allocation3], 4294966784 }
   0xb   :  { %846 = dma.done.wait [#allocation6], 256  }
   0xc   :  { %847 = vsyncadd [#allocation6], 4294967040  ;;  %v45_v0 = vld [vmem:[#allocation5 + $0x8] sm:$0xff]  ;;  %v59_v1 = vld [vmem:[#allocation2] sm:$0xf]  ;;  %s856_s0 = smov [#allocation7]  }
   0xd   :  { %v878_v2 = vperm.slane %v45_v0, 4  ;;  %v44_v3 = vld [vmem:[#allocation5] sm:$0xff]  ;;  %v900_v20 = vperm.slane %v45_v0, 1  ;;  %v902_v21 = vperm.slane %v45_v0, 2  ;;  %v908_v35 = vperm.slane %v45_v0, 0  ;;  %s650_s1 = sshll.u32 %s856_s0, 4  ;;  %s651_s1 = int_to_ptr.vmem [resolvable:$true] %s650_s1 }
   0xe   :  { %v881_v5 = vperm.slane %v44_v3, 1  ;;  %v883_v6 = vperm.slane %v44_v3, 4  ;;  %v885_v8 = vperm.slane %v44_v3, 0  ;;  %v887_v9 = vperm.slane %v44_v3, 2  ;;  %v127_v46 = vld [vmem:[#allocation2 + $0x4] sm:$0xf] }
   0xf   :  { %v60_v4 = vsub.f32 %v59_v1, %v878_v2  ;;  %v889_v10 = vperm.slane %v44_v3, 3  ;;  %v891_v11 = vperm.slane %v44_v3, 5  ;;  %v906_v34 = vperm.slane %v44_v3, 6  ;;  %s652_s25 = sshll.u32 %s1070_s2, 4  ;;  %s653_s25 = int_to_ptr.hbm [resolvable:$true] %s652_s25 }
  0x10   :  { %v68_v14 = vmul.f32 0.0, %v881_v5  ;;  %v74_v15 = vmul.f32 0.0, %v883_v6  ;;  %v70_v17 = vmul.f32 %v59_v1, %v887_v9  ;;  %v80_v40 = vmul.f32 %v59_v1, %v908_v35 }
  0x11   :  { %v62_v7 = vrot.slane %v60_v4, 6  ;;  %v76_v19 = vmul.f32 %v59_v1, %v891_v11  ;;  %v912_v42 = vperm.slane %v44_v3, 7  ;;  %v914_v48 = vperm.slane %v45_v0, 3 }
  0x12   :  { %v128_v52 = vsub.f32 %v127_v46, %v878_v2 }
  0x13   :  { %v64_v12 = vmul.f32 %v62_v7, %v59_v1  ;;  %v66_v53 = vmul.f32 0.0, %v912_v42 }
  0x14   :  { %v130_v59 = vrot.slane %v128_v52, 6 }
  0x15   :  { %v65_v13 = vadd.f32 %v64_v12, %v878_v2 }
  0x16   :  { %v132_v1 = vmul.f32 %v130_v59, %v127_v46 }
  0x17   :  { %v67_v16 = vmul.f32 %v65_v13, %v885_v8  ;;  %v73_v18 = vmul.f32 %v65_v13, %v889_v10  ;;  %v79_v39 = vmul.f32 %v65_v13, %v906_v34 }
  0x18   :  { %v133_v7 = vadd.f32 %v132_v1, %v878_v2 }
  0x19   :  { %v69_v22 = vadd.f32 %v68_v14, %v67_v16  ;;  %v75_v23 = vadd.f32 %v74_v15, %v73_v18  ;;  %v81_v49 = vadd.f32 %v80_v40, %v79_v39  ;;  %v138_v18 = vmul.f32 %v127_v46, %v887_v9 }
  0x1a   :  { %v135_v15 = vmul.f32 %v133_v7, %v885_v8  ;;  %v141_v16 = vmul.f32 %v133_v7, %v889_v10  ;;  %v147_v39 = vmul.f32 %v133_v7, %v906_v34  ;;  %v148_v40 = vmul.f32 %v127_v46, %v908_v35 }
  0x1b   :  { %v71_v24 = vadd.f32 %v70_v17, %v69_v22  ;;  %v77_v25 = vadd.f32 %v76_v19, %v75_v23  ;;  %v82_v56 = vadd.f32 %v81_v49, %v914_v48  ;;  %v144_v22 = vmul.f32 %v127_v46, %v891_v11 }
  0x1c   :  { %v149_v49 = vadd.f32 %v148_v40, %v147_v39 }
  0x1d   :  { %v72_v26 = vadd.f32 %v71_v24, %v900_v20  ;;  %v78_v27 = vadd.f32 %v77_v25, %v902_v21 }
  0x1e   :  { %v150_v46 = vadd.f32 %v149_v49, %v914_v48 }
  0x1f   :  { %v663_v28 = vmul.f32 -1.442695, %v72_v26  ;;  %v664_v29 = vmul.f32 -1.442695, %v78_v27 }
  0x21   :  { %687 = vpow2.f32 %v663_v28 }
  0x22   :  { %689 = vpow2.f32 %v664_v29 }
  0x27   :  { %v688_v30 = vpop.eup %687 }
  0x28   :  { %v690_v31 = vpop.eup %689  ;;  %v86_v32 = vadd.f32 1.0, %v688_v30 }
  0x29   :  { %v105_v33 = vadd.f32 1.0, %v690_v31 }
  0x2a   :  { %691 = vrcp.f32 %v86_v32  ;;  %vm92_vm4 = vweird.f32 %v86_v32  ;;  %v98_v60 = vand.u32 2147483648, %v86_v32  ;;  %v96_v63 = vand.u32 2147483647, %v86_v32 }
  0x2b   :  { %693 = vrcp.f32 %v105_v33  ;;  %v117_v43 = vand.u32 2147483648, %v105_v33  ;;  %vm111_vm0 = vweird.f32 %v105_v33  ;;  %v115_v45 = vand.u32 2147483647, %v105_v33 }
  0x2c   :  { %v99_v3 = vor.u32 1.1754944e-38, %v98_v60  ;;  %vm97_vm7 = vcmp.eq.f32.partialorder %v96_v63, 8.507059e+37 }
  0x2d   :  { %v118_v51 = vor.u32 1.1754944e-38, %v117_v43  ;;  %vm116_vm3 = vcmp.eq.f32.partialorder %v115_v45, 8.507059e+37 }
  0x30   :  { %v692_v36 = vpop.eup %691 }
  0x31   :  { %v694_v37 = vpop.eup %693  ;;  %v88_v38 = vmul.f32 %v692_v36, %v86_v32  ;;  %vm93_vm5 = vweird.f32 %v692_v36 }
  0x32   :  { %v107_v41 = vmul.f32 %v694_v37, %v105_v33  ;;  %vm112_vm1 = vweird.f32 %v694_v37  ;;  %vm94_vm6 = vmor %vm92_vm4, %vm93_vm5 }
  0x33   :  { %v89_v47 = vsub.f32 1.0, %v88_v38  ;;  %vm113_vm2 = vmor %vm111_vm0, %vm112_vm1 }
  0x34   :  { %v108_v44 = vsub.f32 1.0, %v107_v41 }
  0x35   :  { %v90_v55 = vmul.f32 %v692_v36, %v89_v47 }
  0x36   :  { %v109_v50 = vmul.f32 %v694_v37, %v108_v44 }
  0x37   :  { %v91_v62 = vadd.f32 %v692_v36, %v90_v55  ;;  %v196_v55 = vld [vmem:[#allocation2 + $0x8] sm:$0xf] }
  0x38   :  { %v110_v54 = vadd.f32 %v694_v37, %v109_v50  ;;  %v197_v59 = vsub.f32 %v196_v55, %v878_v2 }
  0x39   :  { %v95_v4 = vsel %vm94_vm6, %v692_v36, %v91_v62 }
  0x3a   :  { %v114_v57 = vsel %vm113_vm2, %v694_v37, %v110_v54  ;;  %v100_v12 = vsel %vm97_vm7, %v99_v3, %v95_v4  ;;  %v199_v1 = vrot.slane %v197_v59, 6 }
  0x3b   :  { %v119_v58 = vsel %vm116_vm3, %v118_v51, %v114_v57 }
  0x3c   :  { %v121_v61 = vmul.f32 %v119_v58, %v66_v53  ;;  %v201_v7 = vmul.f32 %v199_v1, %v196_v55 }
  0x3e   :  { %v122_v0 = vadd.f32 %v121_v61, %v82_v56 }
  0x40   :  { %695 = vtanh.f32 %v122_v0 }
  0x46   :  { %v696_v13 = vpop.eup %695 }
  0x47   :  { %v920_v14 = vmul.f32 %v696_v13, %v100_v12 }
  0x49   :  { %v136_v17 = vmul.f32 %v920_v14, %v881_v5  ;;  %v142_v19 = vmul.f32 %v920_v14, %v883_v6  ;;  %v134_v53 = vmul.f32 %v920_v14, %v912_v42 }
  0x4b   :  { %v137_v23 = vadd.f32 %v136_v17, %v135_v15  ;;  %v143_v24 = vadd.f32 %v142_v19, %v141_v16  ;;  %v202_v16 = vadd.f32 %v201_v7, %v878_v2 }
  0x4d   :  { %v139_v25 = vadd.f32 %v138_v18, %v137_v23  ;;  %v145_v26 = vadd.f32 %v144_v22, %v143_v24  ;;  %v204_v19 = vmul.f32 %v202_v16, %v885_v8  ;;  %v210_v22 = vmul.f32 %v202_v16, %v889_v10 }
  0x4e   :  { %v207_v24 = vmul.f32 %v196_v55, %v887_v9 }
  0x4f   :  { %v140_v27 = vadd.f32 %v139_v25, %v900_v20  ;;  %v146_v28 = vadd.f32 %v145_v26, %v902_v21  ;;  %v213_v26 = vmul.f32 %v196_v55, %v891_v11 }
  0x51   :  { %v665_v29 = vmul.f32 -1.442695, %v140_v27  ;;  %v666_v30 = vmul.f32 -1.442695, %v146_v28 }
  0x53   :  { %697 = vpow2.f32 %v665_v29 }
  0x54   :  { %699 = vpow2.f32 %v666_v30 }
  0x59   :  { %v698_v31 = vpop.eup %697 }
  0x5a   :  { %v700_v32 = vpop.eup %699  ;;  %v154_v33 = vadd.f32 1.0, %v698_v31 }
  0x5b   :  { %v173_v36 = vadd.f32 1.0, %v700_v32 }
  0x5c   :  { %701 = vrcp.f32 %v154_v33  ;;  %vm160_vm12 = vweird.f32 %v154_v33  ;;  %v166_v61 = vand.u32 2147483648, %v154_v33  ;;  %v164_v0 = vand.u32 2147483647, %v154_v33 }
  0x5d   :  { %703 = vrcp.f32 %v173_v36  ;;  %v185_v44 = vand.u32 2147483648, %v173_v36  ;;  %vm179_vm8 = vweird.f32 %v173_v36  ;;  %v183_v47 = vand.u32 2147483647, %v173_v36 }
  0x5e   :  { %v167_v3 = vor.u32 1.1754944e-38, %v166_v61  ;;  %vm165_vm15 = vcmp.eq.f32.partialorder %v164_v0, 8.507059e+37 }
  0x5f   :  { %v186_v52 = vor.u32 1.1754944e-38, %v185_v44  ;;  %vm184_vm11 = vcmp.eq.f32.partialorder %v183_v47, 8.507059e+37  ;;  %v217_v44 = vmul.f32 %v196_v55, %v908_v35 }
  0x62   :  { %v702_v37 = vpop.eup %701 }
  0x63   :  { %v704_v38 = vpop.eup %703  ;;  %v156_v43 = vmul.f32 %v702_v37, %v154_v33  ;;  %vm161_vm13 = vweird.f32 %v702_v37 }
  0x64   :  { %v175_v41 = vmul.f32 %v704_v38, %v173_v36  ;;  %vm180_vm9 = vweird.f32 %v704_v38  ;;  %vm162_vm14 = vmor %vm160_vm12, %vm161_vm13 }
  0x65   :  { %v157_v51 = vsub.f32 1.0, %v156_v43  ;;  %vm181_vm10 = vmor %vm179_vm8, %vm180_vm9  ;;  %v216_v43 = vmul.f32 %v202_v16, %v906_v34 }
  0x66   :  { %v176_v45 = vsub.f32 1.0, %v175_v41 }
  0x67   :  { %v158_v57 = vmul.f32 %v702_v37, %v157_v51 }
  0x68   :  { %v177_v50 = vmul.f32 %v704_v38, %v176_v45 }
  0x69   :  { %v159_v63 = vadd.f32 %v702_v37, %v158_v57 }
  0x6a   :  { %v178_v54 = vadd.f32 %v704_v38, %v177_v50 }
  0x6b   :  { %v163_v4 = vsel %vm162_vm14, %v702_v37, %v159_v63 }
  0x6c   :  { %v182_v56 = vsel %vm181_vm10, %v704_v38, %v178_v54  ;;  %v168_v13 = vsel %vm165_vm15, %v167_v3, %v163_v4 }
  0x6d   :  { %v187_v58 = vsel %vm184_vm11, %v186_v52, %v182_v56  ;;  %v218_v52 = vadd.f32 %v217_v44, %v216_v43 }
  0x6e   :  { %v189_v60 = vmul.f32 %v187_v58, %v134_v53  ;;  %v265_v58 = vld [vmem:[#allocation2 + $0xc] sm:$0xf] }
  0x6f   :  { %v219_v55 = vadd.f32 %v218_v52, %v914_v48 }
  0x70   :  { %v190_v62 = vadd.f32 %v189_v60, %v150_v46 }
  0x72   :  { %705 = vtanh.f32 %v190_v62  ;;  %v266_v62 = vsub.f32 %v265_v58, %v878_v2 }
  0x74   :  { %v268_v7 = vrot.slane %v266_v62, 6 }
  0x78   :  { %v706_v12 = vpop.eup %705 }
  0x79   :  { %v192_v15 = vsub.f32 %v706_v12, %v920_v14 }
  0x7b   :  { %v193_v17 = vmul.f32 %v192_v15, %v168_v13  ;;  %v270_v15 = vmul.f32 %v268_v7, %v265_v58 }
  0x7d   :  { %v941_v18 = vadd.f32 %v193_v17, %v920_v14 }
  0x7f   :  { %v205_v23 = vmul.f32 %v941_v18, %v881_v5  ;;  %v211_v25 = vmul.f32 %v941_v18, %v883_v6  ;;  %v203_v56 = vmul.f32 %v941_v18, %v912_v42 }
  0x81   :  { %v206_v27 = vadd.f32 %v205_v23, %v204_v19  ;;  %v212_v28 = vadd.f32 %v211_v25, %v210_v22  ;;  %v271_v22 = vadd.f32 %v270_v15, %v878_v2 }
  0x83   :  { %v208_v29 = vadd.f32 %v207_v24, %v206_v27  ;;  %v214_v30 = vadd.f32 %v213_v26, %v212_v28  ;;  %v273_v25 = vmul.f32 %v271_v22, %v885_v8  ;;  %v279_v26 = vmul.f32 %v271_v22, %v889_v10 }
  0x84   :  { %v276_v28 = vmul.f32 %v265_v58, %v887_v9 }
  0x85   :  { %v209_v14 = vadd.f32 %v208_v29, %v900_v20  ;;  %v215_v31 = vadd.f32 %v214_v30, %v902_v21  ;;  %v282_v30 = vmul.f32 %v265_v58, %v891_v11 }
  0x87   :  { %v667_v32 = vmul.f32 -1.442695, %v209_v14  ;;  %v668_v33 = vmul.f32 -1.442695, %v215_v31 }
  0x89   :  { %707 = vpow2.f32 %v667_v32 }
  0x8a   :  { %709 = vpow2.f32 %v668_v33 }
  0x8f   :  { %v708_v36 = vpop.eup %707 }
  0x90   :  { %v710_v37 = vpop.eup %709  ;;  %v223_v38 = vadd.f32 1.0, %v708_v36 }
  0x91   :  { %v242_v39 = vadd.f32 1.0, %v710_v37 }
  0x92   :  { %711 = vrcp.f32 %v223_v38  ;;  %vm229_vm4 = vweird.f32 %v223_v38  ;;  %v235_v0 = vand.u32 2147483648, %v223_v38  ;;  %v233_v4 = vand.u32 2147483647, %v223_v38 }
  0x93   :  { %713 = vrcp.f32 %v242_v39  ;;  %v254_v49 = vand.u32 2147483648, %v242_v39  ;;  %vm248_vm0 = vweird.f32 %v242_v39  ;;  %v252_v51 = vand.u32 2147483647, %v242_v39 }
  0x94   :  { %v236_v12 = vor.u32 1.1754944e-38, %v235_v0  ;;  %vm234_vm7 = vcmp.eq.f32.partialorder %v233_v4, 8.507059e+37 }
  0x95   :  { %v255_v46 = vor.u32 1.1754944e-38, %v254_v49  ;;  %vm253_vm3 = vcmp.eq.f32.partialorder %v252_v51, 8.507059e+37  ;;  %v286_v49 = vmul.f32 %v265_v58, %v908_v35 }
  0x98   :  { %v712_v40 = vpop.eup %711 }
  0x99   :  { %v714_v41 = vpop.eup %713  ;;  %v225_v47 = vmul.f32 %v712_v40, %v223_v38  ;;  %vm230_vm5 = vweird.f32 %v712_v40 }
  0x9a   :  { %v244_v45 = vmul.f32 %v714_v41, %v242_v39  ;;  %vm249_vm1 = vweird.f32 %v714_v41  ;;  %vm231_vm6 = vmor %vm229_vm4, %vm230_vm5 }
  0x9b   :  { %v226_v54 = vsub.f32 1.0, %v225_v47  ;;  %vm250_vm2 = vmor %vm248_vm0, %vm249_vm1  ;;  %v285_v47 = vmul.f32 %v271_v22, %v906_v34 }
  0x9c   :  { %v245_v50 = vsub.f32 1.0, %v244_v45 }
  0x9d   :  { %v227_v60 = vmul.f32 %v712_v40, %v226_v54 }
  0x9e   :  { %v246_v53 = vmul.f32 %v714_v41, %v245_v50 }
  0x9f   :  { %v228_v3 = vadd.f32 %v712_v40, %v227_v60 }
  0xa0   :  { %v247_v57 = vadd.f32 %v714_v41, %v246_v53 }
  0xa1   :  { %v232_v13 = vsel %vm231_vm6, %v712_v40, %v228_v3 }
  0xa2   :  { %v251_v59 = vsel %vm250_vm2, %v714_v41, %v247_v57  ;;  %v237_v17 = vsel %vm234_vm7, %v236_v12, %v232_v13 }
  0xa3   :  { %v256_v61 = vsel %vm253_vm3, %v255_v46, %v251_v59  ;;  %v287_v46 = vadd.f32 %v286_v49, %v285_v47 }
  0xa4   :  { %v258_v63 = vmul.f32 %v256_v61, %v203_v56  ;;  %v334_v61 = vld [vmem:[#allocation2 + $0x10] sm:$0xf] }
  0xa5   :  { %v288_v58 = vadd.f32 %v287_v46, %v914_v48 }
  0xa6   :  { %v259_v1 = vadd.f32 %v258_v63, %v219_v55 }
  0xa8   :  { %715 = vtanh.f32 %v259_v1  ;;  %v335_v1 = vsub.f32 %v334_v61, %v878_v2 }
  0xaa   :  { %v337_v15 = vrot.slane %v335_v1, 6 }
  0xae   :  { %v716_v16 = vpop.eup %715 }
  0xaf   :  { %v261_v19 = vsub.f32 %v716_v16, %v941_v18 }
  0xb1   :  { %v262_v23 = vmul.f32 %v261_v19, %v237_v17  ;;  %v339_v19 = vmul.f32 %v337_v15, %v334_v61 }
  0xb3   :  { %v962_v24 = vadd.f32 %v262_v23, %v941_v18 }
  0xb5   :  { %v274_v27 = vmul.f32 %v962_v24, %v881_v5  ;;  %v280_v29 = vmul.f32 %v962_v24, %v883_v6  ;;  %v272_v59 = vmul.f32 %v962_v24, %v912_v42 }
  0xb7   :  { %v275_v14 = vadd.f32 %v274_v27, %v273_v25  ;;  %v281_v31 = vadd.f32 %v280_v29, %v279_v26  ;;  %v340_v26 = vadd.f32 %v339_v19, %v878_v2 }
  0xb9   :  { %v277_v32 = vadd.f32 %v276_v28, %v275_v14  ;;  %v283_v33 = vadd.f32 %v282_v30, %v281_v31  ;;  %v342_v29 = vmul.f32 %v340_v26, %v885_v8  ;;  %v348_v30 = vmul.f32 %v340_v26, %v889_v10 }
  0xba   :  { %v345_v31 = vmul.f32 %v334_v61, %v887_v9 }
  0xbb   :  { %v278_v18 = vadd.f32 %v277_v32, %v900_v20  ;;  %v284_v36 = vadd.f32 %v283_v33, %v902_v21  ;;  %v351_v33 = vmul.f32 %v334_v61, %v891_v11 }
  0xbd   :  { %v669_v37 = vmul.f32 -1.442695, %v278_v18  ;;  %v670_v38 = vmul.f32 -1.442695, %v284_v36 }
  0xbf   :  { %717 = vpow2.f32 %v669_v37 }
  0xc0   :  { %719 = vpow2.f32 %v670_v38 }
  0xc5   :  { %v718_v39 = vpop.eup %717 }
  0xc6   :  { %v720_v40 = vpop.eup %719  ;;  %v292_v41 = vadd.f32 1.0, %v718_v39 }
  0xc7   :  { %v311_v43 = vadd.f32 1.0, %v720_v40 }
  0xc8   :  { %721 = vrcp.f32 %v292_v41  ;;  %vm298_vm12 = vweird.f32 %v292_v41  ;;  %v304_v4 = vand.u32 2147483648, %v292_v41  ;;  %v302_v13 = vand.u32 2147483647, %v292_v41 }
  0xc9   :  { %723 = vrcp.f32 %v311_v43  ;;  %v323_v52 = vand.u32 2147483648, %v311_v43  ;;  %vm317_vm8 = vweird.f32 %v311_v43  ;;  %v321_v54 = vand.u32 2147483647, %v311_v43 }
  0xca   :  { %v305_v16 = vor.u32 1.1754944e-38, %v304_v4  ;;  %vm303_vm15 = vcmp.eq.f32.partialorder %v302_v13, 8.507059e+37 }
  0xcb   :  { %v324_v55 = vor.u32 1.1754944e-38, %v323_v52  ;;  %vm322_vm11 = vcmp.eq.f32.partialorder %v321_v54, 8.507059e+37  ;;  %v355_v52 = vmul.f32 %v334_v61, %v908_v35 }
  0xce   :  { %v722_v44 = vpop.eup %721 }
  0xcf   :  { %v724_v45 = vpop.eup %723  ;;  %v294_v51 = vmul.f32 %v722_v44, %v292_v41  ;;  %vm299_vm13 = vweird.f32 %v722_v44 }
  0xd0   :  { %v313_v50 = vmul.f32 %v724_v45, %v311_v43  ;;  %vm318_vm9 = vweird.f32 %v724_v45  ;;  %vm300_vm14 = vmor %vm298_vm12, %vm299_vm13 }
  0xd1   :  { %v295_v57 = vsub.f32 1.0, %v294_v51  ;;  %vm319_vm10 = vmor %vm317_vm8, %vm318_vm9  ;;  %v354_v51 = vmul.f32 %v340_v26, %v906_v34 }
  0xd2   :  { %v314_v53 = vsub.f32 1.0, %v313_v50 }
  0xd3   :  { %v296_v63 = vmul.f32 %v722_v44, %v295_v57 }
  0xd4   :  { %v315_v56 = vmul.f32 %v724_v45, %v314_v53 }
  0xd5   :  { %v297_v12 = vadd.f32 %v722_v44, %v296_v63 }
  0xd6   :  { %v316_v60 = vadd.f32 %v724_v45, %v315_v56 }
  0xd7   :  { %v301_v17 = vsel %vm300_vm14, %v722_v44, %v297_v12 }
  0xd8   :  { %v320_v62 = vsel %vm319_vm10, %v724_v45, %v316_v60  ;;  %v306_v23 = vsel %vm303_vm15, %v305_v16, %v301_v17 }
  0xd9   :  { %v325_v0 = vsel %vm322_vm11, %v324_v55, %v320_v62  ;;  %v356_v55 = vadd.f32 %v355_v52, %v354_v51 }
  0xda   :  { %v327_v3 = vmul.f32 %v325_v0, %v272_v59  ;;  %v403_v0 = vld [vmem:[#allocation2 + $0x14] sm:$0xf] }
  0xdb   :  { %v357_v61 = vadd.f32 %v356_v55, %v914_v48 }
  0xdc   :  { %v328_v7 = vadd.f32 %v327_v3, %v288_v58 }
  0xde   :  { %725 = vtanh.f32 %v328_v7  ;;  %v404_v7 = vsub.f32 %v403_v0, %v878_v2 }
  0xe0   :  { %v406_v19 = vrot.slane %v404_v7, 6 }
  0xe4   :  { %v726_v22 = vpop.eup %725 }
  0xe5   :  { %v330_v25 = vsub.f32 %v726_v22, %v962_v24 }
  0xe7   :  { %v331_v27 = vmul.f32 %v330_v25, %v306_v23  ;;  %v408_v25 = vmul.f32 %v406_v19, %v403_v0 }
  0xe9   :  { %v983_v28 = vadd.f32 %v331_v27, %v962_v24 }
  0xeb   :  { %v343_v14 = vmul.f32 %v983_v28, %v881_v5  ;;  %v349_v32 = vmul.f32 %v983_v28, %v883_v6  ;;  %v341_v62 = vmul.f32 %v983_v28, %v912_v42 }
  0xed   :  { %v344_v18 = vadd.f32 %v343_v14, %v342_v29  ;;  %v350_v36 = vadd.f32 %v349_v32, %v348_v30  ;;  %v409_v30 = vadd.f32 %v408_v25, %v878_v2 }
  0xef   :  { %v346_v37 = vadd.f32 %v345_v31, %v344_v18  ;;  %v352_v38 = vadd.f32 %v351_v33, %v350_v36  ;;  %v411_v32 = vmul.f32 %v409_v30, %v885_v8  ;;  %v417_v33 = vmul.f32 %v409_v30, %v889_v10 }
  0xf0   :  { %v414_v36 = vmul.f32 %v403_v0, %v887_v9 }
  0xf1   :  { %v347_v24 = vadd.f32 %v346_v37, %v900_v20  ;;  %v353_v39 = vadd.f32 %v352_v38, %v902_v21  ;;  %v420_v38 = vmul.f32 %v403_v0, %v891_v11 }
  0xf3   :  { %v671_v40 = vmul.f32 -1.442695, %v347_v24  ;;  %v672_v41 = vmul.f32 -1.442695, %v353_v39 }
  0xf5   :  { %727 = vpow2.f32 %v671_v40 }
  0xf6   :  { %729 = vpow2.f32 %v672_v41 }
  0xfb   :  { %v728_v43 = vpop.eup %727 }
  0xfc   :  { %v730_v44 = vpop.eup %729  ;;  %v361_v45 = vadd.f32 1.0, %v728_v43 }
  0xfd   :  { %v380_v47 = vadd.f32 1.0, %v730_v44 }
  0xfe   :  { %731 = vrcp.f32 %v361_v45  ;;  %vm367_vm4 = vweird.f32 %v361_v45  ;;  %v373_v13 = vand.u32 2147483648, %v361_v45  ;;  %v371_v17 = vand.u32 2147483647, %v361_v45 }
  0xff   :  { %733 = vrcp.f32 %v380_v47  ;;  %v392_v46 = vand.u32 2147483648, %v380_v47  ;;  %vm386_vm0 = vweird.f32 %v380_v47  ;;  %v390_v57 = vand.u32 2147483647, %v380_v47 }
 0x100   :  { %v374_v22 = vor.u32 1.1754944e-38, %v373_v13  ;;  %vm372_vm7 = vcmp.eq.f32.partialorder %v371_v17, 8.507059e+37 }
 0x101   :  { %v393_v58 = vor.u32 1.1754944e-38, %v392_v46  ;;  %vm391_vm3 = vcmp.eq.f32.partialorder %v390_v57, 8.507059e+37  ;;  %v424_v46 = vmul.f32 %v403_v0, %v908_v35 }
 0x104   :  { %v732_v49 = vpop.eup %731 }
 0x105   :  { %v734_v50 = vpop.eup %733  ;;  %v363_v54 = vmul.f32 %v732_v49, %v361_v45  ;;  %vm368_vm5 = vweird.f32 %v732_v49 }
 0x106   :  { %v382_v53 = vmul.f32 %v734_v50, %v380_v47  ;;  %vm387_vm1 = vweird.f32 %v734_v50  ;;  %vm369_vm6 = vmor %vm367_vm4, %vm368_vm5 }
 0x107   :  { %v364_v60 = vsub.f32 1.0, %v363_v54  ;;  %vm388_vm2 = vmor %vm386_vm0, %vm387_vm1  ;;  %v423_v54 = vmul.f32 %v409_v30, %v906_v34 }
 0x108   :  { %v383_v56 = vsub.f32 1.0, %v382_v53 }
 0x109   :  { %v365_v3 = vmul.f32 %v732_v49, %v364_v60 }
 0x10a   :  { %v384_v59 = vmul.f32 %v734_v50, %v383_v56 }
 0x10b   :  { %v366_v16 = vadd.f32 %v732_v49, %v365_v3 }
 0x10c   :  { %v385_v63 = vadd.f32 %v734_v50, %v384_v59 }
 0x10d   :  { %v370_v23 = vsel %vm369_vm6, %v732_v49, %v366_v16 }
 0x10e   :  { %v389_v1 = vsel %vm388_vm2, %v734_v50, %v385_v63  ;;  %v375_v27 = vsel %vm372_vm7, %v374_v22, %v370_v23 }
 0x10f   :  { %v394_v4 = vsel %vm391_vm3, %v393_v58, %v389_v1  ;;  %v425_v58 = vadd.f32 %v424_v46, %v423_v54 }
 0x110   :  { %v396_v12 = vmul.f32 %v394_v4, %v341_v62  ;;  %v472_v4 = vld [vmem:[#allocation2 + $0x18] sm:$0xf] }
 0x111   :  { %v426_v0 = vadd.f32 %v425_v58, %v914_v48 }
 0x112   :  { %v397_v15 = vadd.f32 %v396_v12, %v357_v61 }
 0x114   :  { %735 = vtanh.f32 %v397_v15  ;;  %v473_v15 = vsub.f32 %v472_v4, %v878_v2 }
 0x116   :  { %v475_v25 = vrot.slane %v473_v15, 6 }
 0x11a   :  { %v736_v26 = vpop.eup %735 }
 0x11b   :  { %v399_v29 = vsub.f32 %v736_v26, %v983_v28 }
 0x11d   :  { %v400_v14 = vmul.f32 %v399_v29, %v375_v27  ;;  %v477_v29 = vmul.f32 %v475_v25, %v472_v4 }
 0x11f   :  { %v1004_v31 = vadd.f32 %v400_v14, %v983_v28 }
 0x121   :  { %v412_v18 = vmul.f32 %v1004_v31, %v881_v5  ;;  %v418_v37 = vmul.f32 %v1004_v31, %v883_v6  ;;  %v410_v1 = vmul.f32 %v1004_v31, %v912_v42 }
 0x123   :  { %v413_v24 = vadd.f32 %v412_v18, %v411_v32  ;;  %v419_v39 = vadd.f32 %v418_v37, %v417_v33  ;;  %v478_v33 = vadd.f32 %v477_v29, %v878_v2 }
 0x125   :  { %v415_v40 = vadd.f32 %v414_v36, %v413_v24  ;;  %v421_v41 = vadd.f32 %v420_v38, %v419_v39  ;;  %v480_v37 = vmul.f32 %v478_v33, %v885_v8  ;;  %v486_v38 = vmul.f32 %v478_v33, %v889_v10 }
 0x126   :  { %v483_v39 = vmul.f32 %v472_v4, %v887_v9 }
 0x127   :  { %v416_v28 = vadd.f32 %v415_v40, %v900_v20  ;;  %v422_v43 = vadd.f32 %v421_v41, %v902_v21  ;;  %v489_v41 = vmul.f32 %v472_v4, %v891_v11 }
 0x129   :  { %v673_v44 = vmul.f32 -1.442695, %v416_v28  ;;  %v674_v45 = vmul.f32 -1.442695, %v422_v43 }
 0x12b   :  { %737 = vpow2.f32 %v673_v44 }
 0x12c   :  { %739 = vpow2.f32 %v674_v45 }
 0x131   :  { %v738_v47 = vpop.eup %737 }
 0x132   :  { %v740_v49 = vpop.eup %739  ;;  %v430_v50 = vadd.f32 1.0, %v738_v47 }
 0x133   :  { %v449_v51 = vadd.f32 1.0, %v740_v49 }
 0x134   :  { %741 = vrcp.f32 %v430_v50  ;;  %vm436_vm12 = vweird.f32 %v430_v50  ;;  %v442_v17 = vand.u32 2147483648, %v430_v50  ;;  %v440_v23 = vand.u32 2147483647, %v430_v50 }
 0x135   :  { %743 = vrcp.f32 %v449_v51  ;;  %v461_v55 = vand.u32 2147483648, %v449_v51  ;;  %vm455_vm8 = vweird.f32 %v449_v51  ;;  %v459_v60 = vand.u32 2147483647, %v449_v51 }
 0x136   :  { %v443_v26 = vor.u32 1.1754944e-38, %v442_v17  ;;  %vm441_vm15 = vcmp.eq.f32.partialorder %v440_v23, 8.507059e+37 }
 0x137   :  { %v462_v61 = vor.u32 1.1754944e-38, %v461_v55  ;;  %vm460_vm11 = vcmp.eq.f32.partialorder %v459_v60, 8.507059e+37  ;;  %v493_v55 = vmul.f32 %v472_v4, %v908_v35 }
 0x13a   :  { %v742_v52 = vpop.eup %741 }
 0x13b   :  { %v744_v53 = vpop.eup %743  ;;  %v432_v57 = vmul.f32 %v742_v52, %v430_v50  ;;  %vm437_vm13 = vweird.f32 %v742_v52 }
 0x13c   :  { %v451_v56 = vmul.f32 %v744_v53, %v449_v51  ;;  %vm456_vm9 = vweird.f32 %v744_v53  ;;  %vm438_vm14 = vmor %vm436_vm12, %vm437_vm13 }
 0x13d   :  { %v433_v63 = vsub.f32 1.0, %v432_v57  ;;  %vm457_vm10 = vmor %vm455_vm8, %vm456_vm9  ;;  %v492_v57 = vmul.f32 %v478_v33, %v906_v34 }
 0x13e   :  { %v452_v59 = vsub.f32 1.0, %v451_v56 }
 0x13f   :  { %v434_v12 = vmul.f32 %v742_v52, %v433_v63 }
 0x140   :  { %v453_v62 = vmul.f32 %v744_v53, %v452_v59 }
 0x141   :  { %v435_v22 = vadd.f32 %v742_v52, %v434_v12 }
 0x142   :  { %v454_v3 = vadd.f32 %v744_v53, %v453_v62 }
 0x143   :  { %v439_v27 = vsel %vm438_vm14, %v742_v52, %v435_v22 }
 0x144   :  { %v458_v7 = vsel %vm457_vm10, %v744_v53, %v454_v3  ;;  %v444_v14 = vsel %vm441_vm15, %v443_v26, %v439_v27 }
 0x145   :  { %v463_v13 = vsel %vm460_vm11, %v462_v61, %v458_v7  ;;  %v494_v61 = vadd.f32 %v493_v55, %v492_v57 }
 0x146   :  { %v465_v16 = vmul.f32 %v463_v13, %v410_v1  ;;  %v541_v13 = vld [vmem:[#allocation2 + $0x1c] sm:$0xf] }
 0x147   :  { %v495_v4 = vadd.f32 %v494_v61, %v914_v48 }
 0x148   :  { %v466_v19 = vadd.f32 %v465_v16, %v426_v0 }
 0x14a   :  { %745 = vtanh.f32 %v466_v19  ;;  %v542_v19 = vsub.f32 %v541_v13, %v878_v2 }
 0x14c   :  { %v544_v29 = vrot.slane %v542_v19, 6  ;;  %v771_v19 = vld [vmem:[#allocation5 + $0x8] sm:$0xff] }
 0x150   :  { %v746_v30 = vpop.eup %745 }
 0x151   :  { %v468_v32 = vsub.f32 %v746_v30, %v1004_v31 }
 0x153   :  { %v469_v18 = vmul.f32 %v468_v32, %v444_v14  ;;  %v546_v32 = vmul.f32 %v544_v29, %v541_v13 }
 0x155   :  { %v1025_v36 = vadd.f32 %v469_v18, %v1004_v31 }
 0x157   :  { %v481_v24 = vmul.f32 %v1025_v36, %v881_v5  ;;  %v487_v40 = vmul.f32 %v1025_v36, %v883_v6  ;;  %v479_v7 = vmul.f32 %v1025_v36, %v912_v42 }
 0x159   :  { %v482_v28 = vadd.f32 %v481_v24, %v480_v37  ;;  %v488_v43 = vadd.f32 %v487_v40, %v486_v38  ;;  %v547_v38 = vadd.f32 %v546_v32, %v878_v2  ;;  %v622_v32 = vperm.slane %v771_v19, 7 }
 0x15b   :  { %v484_v44 = vadd.f32 %v483_v39, %v482_v28  ;;  %v490_v45 = vadd.f32 %v489_v41, %v488_v43  ;;  %v549_v40 = vmul.f32 %v547_v38, %v885_v8  ;;  %v555_v41 = vmul.f32 %v547_v38, %v889_v10 }
 0x15c   :  { %v552_v43 = vmul.f32 %v541_v13, %v887_v9 }
 0x15d   :  { %v485_v31 = vadd.f32 %v484_v44, %v900_v20  ;;  %v491_v47 = vadd.f32 %v490_v45, %v902_v21  ;;  %v558_v45 = vmul.f32 %v541_v13, %v891_v11 }
 0x15f   :  { %v675_v49 = vmul.f32 -1.442695, %v485_v31  ;;  %v676_v50 = vmul.f32 -1.442695, %v491_v47 }
 0x161   :  { %747 = vpow2.f32 %v675_v49 }
 0x162   :  { %749 = vpow2.f32 %v676_v50 }
 0x167   :  { %v748_v51 = vpop.eup %747 }
 0x168   :  { %v750_v52 = vpop.eup %749  ;;  %v499_v53 = vadd.f32 1.0, %v748_v51 }
 0x169   :  { %v518_v54 = vadd.f32 1.0, %v750_v52 }
 0x16a   :  { %751 = vrcp.f32 %v499_v53  ;;  %vm505_vm4 = vweird.f32 %v499_v53  ;;  %v511_v23 = vand.u32 2147483648, %v499_v53  ;;  %v509_v27 = vand.u32 2147483647, %v499_v53 }
 0x16b   :  { %753 = vrcp.f32 %v518_v54  ;;  %v530_v58 = vand.u32 2147483648, %v518_v54  ;;  %vm524_vm0 = vweird.f32 %v518_v54  ;;  %v528_v63 = vand.u32 2147483647, %v518_v54 }
 0x16c   :  { %v512_v30 = vor.u32 1.1754944e-38, %v511_v23  ;;  %vm510_vm7 = vcmp.eq.f32.partialorder %v509_v27, 8.507059e+37 }
 0x16d   :  { %v531_v0 = vor.u32 1.1754944e-38, %v530_v58  ;;  %vm529_vm3 = vcmp.eq.f32.partialorder %v528_v63, 8.507059e+37 }
 0x170   :  { %v752_v46 = vpop.eup %751 }
 0x171   :  { %v754_v56 = vpop.eup %753  ;;  %v501_v60 = vmul.f32 %v752_v46, %v499_v53  ;;  %vm506_vm5 = vweird.f32 %v752_v46  ;;  %v561_v53 = vmul.f32 %v547_v38, %v906_v34 }
 0x172   :  { %v520_v59 = vmul.f32 %v754_v56, %v518_v54  ;;  %vm525_vm1 = vweird.f32 %v754_v56  ;;  %vm507_vm6 = vmor %vm505_vm4, %vm506_vm5  ;;  %v562_v54 = vmul.f32 %v541_v13, %v908_v35  ;;  %vm643_vm5 = vcmask 11266  }
 0x173   :  { %v502_v3 = vsub.f32 1.0, %v501_v60  ;;  %vm526_vm2 = vmor %vm524_vm0, %vm525_vm1  ;;  %vm611_vm0 = vcmask 183298   ;;  %vm620_vm1 = vcmask 7168  }
 0x174   :  { %v521_v62 = vsub.f32 1.0, %v520_v59  ;;  %v563_v55 = vadd.f32 %v562_v54, %v561_v53 }
 0x175   :  { %v503_v16 = vmul.f32 %v752_v46, %v502_v3 }
 0x176   :  { %v522_v1 = vmul.f32 %v754_v56, %v521_v62  ;;  %v564_v34 = vadd.f32 %v563_v55, %v914_v48 }
 0x177   :  { %v504_v26 = vadd.f32 %v752_v46, %v503_v16 }
 0x178   :  { %v523_v12 = vadd.f32 %v754_v56, %v522_v1 }
 0x179   :  { %v508_v14 = vsel %vm507_vm6, %v752_v46, %v504_v26  ;;  %v615_v26 = vperm.slane %v771_v19, 6 }
 0x17a   :  { %v527_v15 = vsel %vm526_vm2, %v754_v56, %v523_v12  ;;  %v513_v18 = vsel %vm510_vm7, %v512_v30, %v508_v14 }
 0x17b   :  { %v532_v17 = vsel %vm529_vm3, %v531_v0, %v527_v15 }
 0x17c   :  { %v534_v22 = vmul.f32 %v532_v17, %v479_v7 }
 0x17e   :  { %v535_v25 = vadd.f32 %v534_v22, %v495_v4  ;;  %v609_v22 = vperm.slane %v771_v19, 5 }
 0x180   :  { %755 = vtanh.f32 %v535_v25 }
 0x186   :  { %v756_v33 = vpop.eup %755 }
 0x187   :  { %v537_v37 = vsub.f32 %v756_v33, %v1025_v36 }
 0x189   :  { %v538_v24 = vmul.f32 %v537_v37, %v513_v18 }
 0x18b   :  { %v1046_v39 = vadd.f32 %v538_v24, %v1025_v36 }
 0x18d   :  { %v550_v28 = vmul.f32 %v1046_v39, %v881_v5  ;;  %v556_v44 = vmul.f32 %v1046_v39, %v883_v6  ;;  %v548_v62 = vmul.f32 %v1046_v39, %v912_v42 }
 0x18f   :  { %v551_v31 = vadd.f32 %v550_v28, %v549_v40  ;;  %v557_v2 = vadd.f32 %v556_v44, %v555_v41 }
 0x191   :  { %v553_v47 = vadd.f32 %v552_v43, %v551_v31  ;;  %v559_v49 = vadd.f32 %v558_v45, %v557_v2 }
 0x193   :  { %v554_v36 = vadd.f32 %v553_v47, %v900_v20  ;;  %v560_v8 = vadd.f32 %v559_v49, %v902_v21 }
 0x195   :  { %v677_v50 = vmul.f32 -1.442695, %v554_v36  ;;  %v678_v10 = vmul.f32 -1.442695, %v560_v8 }
 0x197   :  { %757 = vpow2.f32 %v677_v50 }
 0x198   :  { %759 = vpow2.f32 %v678_v10 }
 0x19d   :  { %v758_v5 = vpop.eup %757 }
 0x19e   :  { %v760_v51 = vpop.eup %759  ;;  %v568_v9 = vadd.f32 1.0, %v758_v5 }
 0x19f   :  { %v587_v52 = vadd.f32 1.0, %v760_v51 }
 0x1a0   :  { %761 = vrcp.f32 %v568_v9  ;;  %vm574_vm12 = vweird.f32 %v568_v9  ;;  %v580_v0 = vand.u32 2147483648, %v568_v9  ;;  %v578_v13 = vand.u32 2147483647, %v568_v9 }
 0x1a1   :  { %763 = vrcp.f32 %v587_v52  ;;  %v599_v56 = vand.u32 2147483648, %v587_v52  ;;  %vm593_vm8 = vweird.f32 %v587_v52  ;;  %v597_v57 = vand.u32 2147483647, %v587_v52 }
 0x1a2   :  { %v581_v4 = vor.u32 1.1754944e-38, %v580_v0  ;;  %vm579_vm15 = vcmp.eq.f32.partialorder %v578_v13, 8.507059e+37 }
 0x1a3   :  { %v600_v58 = vor.u32 1.1754944e-38, %v599_v56  ;;  %vm598_vm11 = vcmp.eq.f32.partialorder %v597_v57, 8.507059e+37 }
 0x1a6   :  { %v762_v6 = vpop.eup %761 }
 0x1a7   :  { %v764_v11 = vpop.eup %763  ;;  %v570_v20 = vmul.f32 %v762_v6, %v568_v9  ;;  %vm575_vm13 = vweird.f32 %v762_v6 }
 0x1a8   :  { %v589_v46 = vmul.f32 %v764_v11, %v587_v52  ;;  %vm594_vm9 = vweird.f32 %v764_v11  ;;  %vm576_vm14 = vmor %vm574_vm12, %vm575_vm13 }
 0x1a9   :  { %v571_v60 = vsub.f32 1.0, %v570_v20  ;;  %vm595_vm10 = vmor %vm593_vm8, %vm594_vm9 }
 0x1aa   :  { %v590_v21 = vsub.f32 1.0, %v589_v46 }
 0x1ab   :  { %v572_v61 = vmul.f32 %v762_v6, %v571_v60 }
 0x1ac   :  { %v591_v59 = vmul.f32 %v764_v11, %v590_v21 }
 0x1ad   :  { %v573_v12 = vadd.f32 %v762_v6, %v572_v61 }
 0x1ae   :  { %v592_v63 = vadd.f32 %v764_v11, %v591_v59 }
 0x1af   :  { %v577_v15 = vsel %vm576_vm14, %v762_v6, %v573_v12 }
 0x1b0   :  { %v596_v35 = vsel %vm595_vm10, %v764_v11, %v592_v63  ;;  %v582_v16 = vsel %vm579_vm15, %v581_v4, %v577_v15 }
 0x1b1   :  { %v601_v1 = vsel %vm598_vm11, %v600_v58, %v596_v35 }
 0x1b2   :  { %v603_v3 = vmul.f32 %v601_v1, %v548_v62 }
 0x1b4   :  { %v604_v7 = vadd.f32 %v603_v3, %v564_v34 }
 0x1b6   :  { %765 = vtanh.f32 %v604_v7 }
 0x1bc   :  { %v766_v42 = vpop.eup %765 }
 0x1bd   :  { %v606_v17 = vsub.f32 %v766_v42, %v1046_v39 }
 0x1bf   :  { %v607_v48 = vmul.f32 %v606_v17, %v582_v16 }
 0x1c1   :  { %v608_v23 = vadd.f32 %v607_v48, %v1046_v39 }
 0x1c3   :  { %v610_v25 = vmul.f32 %v609_v22, %v608_v23  ;;  %v616_v29 = vmul.f32 %v615_v26, %v608_v23 }
 0x1c5   :  { %v612_v27 = vsel %vm611_vm0, %v610_v25, 0.0  ;;  %v617_v30 = vsel %vm611_vm0, %v616_v29, 0.0 }
 0x1c6   :  { %613 = vadd.xlane.f32.xlu0 %v612_v27 }
 0x1ce   :  { %618 = vadd.xlane.f32.xlu0 %v617_v30 }
 0x239   :  { %v614_v14 = vpop.xlane.xlu0 %613 }
 0x241   :  { %v619_v33 = vpop.xlane.xlu0 %618 }
 0x242   :  { %v621_v18 = vsel %vm620_vm1, %v614_v14, %v619_v33 }
 0x243   :  { %v623_v37 = vadd.f32 %v622_v32, %v621_v18 }
 0x245   :  { %v679_v38 = vmul.f32 -1.442695, %v623_v37 }
 0x247   :  { %767 = vpow2.f32 %v679_v38 }
 0x24d   :  { %v768_v24 = vpop.eup %767 }
 0x24e   :  { %v627_v40 = vadd.f32 1.0, %v768_v24 }
 0x250   :  { %769 = vrcp.f32 %v627_v40  ;;  %v639_v43 = vand.u32 2147483648, %v627_v40  ;;  %v637_v45 = vand.u32 2147483647, %v627_v40  ;;  %vm633_vm3 = vweird.f32 %v627_v40 }
 0x252   :  { %v640_v2 = vor.u32 1.1754944e-38, %v639_v43  ;;  %vm638_vm6 = vcmp.eq.f32.partialorder %v637_v45, 8.507059e+37 }
 0x256   :  { %v770_v39 = vpop.eup %769 }
 0x257   :  { %v629_v41 = vmul.f32 %v770_v39, %v627_v40  ;;  %vm634_vm2 = vweird.f32 %v770_v39 }
 0x258   :  { %vm635_vm4 = vmor %vm633_vm3, %vm634_vm2 }
 0x259   :  { %v630_v28 = vsub.f32 1.0, %v629_v41 }
 0x25b   :  { %v631_v44 = vmul.f32 %v770_v39, %v630_v28 }
 0x25d   :  { %v632_v31 = vadd.f32 %v770_v39, %v631_v44 }
 0x25f   :  { %v636_v47 = vsel %vm635_vm4, %v770_v39, %v632_v31 }
 0x260   :  { %v641_v49 = vsel %vm638_vm6, %v640_v2, %v636_v47 }
 0x261   :  { %644 = vst.msk [vmem:[#allocation7 - $0x2] sm:$0xc] %vm643_vm5, %v641_v49 }
 0x262   :  { %655 = dma.vmem_to_hbm [thread:$0]  %s651_s1, 32, %s653_s25, [#allocation4]  }
 0x263   :  { %848 = dma.done.wait [#allocation4], 32  }
 0x264   :  { %849 = vsyncadd [#allocation4], 4294967264 }
 0x265   :  { %660 = vsyncpa [#allocation3], 1 }
 0x266   :  { %661 = vsyncpa [#allocation6], 1 }
 0x267   :  { %662 = vsyncpa [#allocation4], 1 }

</bundles_post_ra>
